<compile_context>
chip_gen: v7x
topology: tpu7x:2x2x1
jax: 0.10.0
libtpu: 0.0.40
codegen_flags: <defaults>
</compile_context>

<pallas_src>
import functools

import jax
import jax.numpy as jnp
from jax.experimental import pallas as pl
from jax.experimental.pallas import tpu as pltpu


def dqn_kernel(x_ref,
               w1_ref, b1_ref,
               w2_ref, b2_ref,
               w3_ref, b3_ref,
               w4_ref, b4_ref,
               out_ref):
    # x / weights arrive as bf16; every matmul accumulates in f32 on the MXU.
    x = x_ref[...]

    # fc1 + ReLU
    h = jnp.dot(x, w1_ref[...], preferred_element_type=jnp.float32) + b1_ref[...]
    h = jnp.maximum(h, 0.0).astype(jnp.bfloat16)

    # fc2 + ReLU
    h = jnp.dot(h, w2_ref[...], preferred_element_type=jnp.float32) + b2_ref[...]
    h = jnp.maximum(h, 0.0).astype(jnp.bfloat16)

    # fc2_1 + ReLU
    h = jnp.dot(h, w3_ref[...], preferred_element_type=jnp.float32) + b3_ref[...]
    h = jnp.maximum(h, 0.0).astype(jnp.bfloat16)

    # fc3 (no activation), stored in f32
    y = jnp.dot(h, w4_ref[...], preferred_element_type=jnp.float32) + b4_ref[...]
    out_ref[...] = y.astype(out_ref.dtype)


def _choose_batch_tile(batch, input_dim, out_dim,
                       vmem_budget_bytes=8 * 1024 * 1024,
                       max_tile=2048):
    """Largest multiple-of-8 batch tile whose double-buffered x/out tiles fit a
    VMEM budget that is safe on every TPU generation (v5e/v6e/v7x)."""
    # per-row cost: 2x-buffered bf16 x tile + 2x-buffered f32 out tile
    bytes_per_row = 2 * input_dim * 2 + 2 * out_dim * 4
    tb = min(max_tile, max(8, batch))
    tb = max(8, (tb // 8) * 8)
    while tb > 8 and tb * bytes_per_row > vmem_budget_bytes:
        tb //= 2
    return tb


@functools.partial(jax.jit, static_argnames=("batch_tile",))
def dqn_forward(x, params, batch_tile=None):
    """x: (batch, input_dim) float32. params: weights (in, out) and biases (1, out)."""
    batch, input_dim = x.shape
    out_dim = params["w4"].shape[1]

    tb = batch_tile if batch_tile is not None else _choose_batch_tile(
        batch, input_dim, out_dim)
    num_tiles = pl.cdiv(batch, tb)
    padded = num_tiles * tb
    if padded != batch:
        x = jnp.pad(x, ((0, padded - batch), (0, 0)))

    # bf16 for the MXU operands; biases stay f32 (added into the f32 accumulator).
    x_bf16 = x.astype(jnp.bfloat16)
    ws = [params[f"w{i}"].astype(jnp.bfloat16) for i in (1, 2, 3, 4)]
    bs = [params[f"b{i}"].astype(jnp.float32) for i in (1, 2, 3, 4)]

    # Weights/biases: full-array block with a constant index_map -> VMEM-resident.
    resident = lambda arr: pl.BlockSpec(arr.shape, lambda i: (0, 0))

    wb_args, wb_specs = [], []
    for w, b in zip(ws, bs):
        wb_args += [w, b]
        wb_specs += [resident(w), resident(b)]

    out = pl.pallas_call(
        dqn_kernel,
        out_shape=jax.ShapeDtypeStruct((padded, out_dim), jnp.float32),
        grid=(num_tiles,),
        in_specs=[pl.BlockSpec((tb, input_dim), lambda i: (i, 0))] + wb_specs,
        out_specs=pl.BlockSpec((tb, out_dim), lambda i: (i, 0)),
        compiler_params=pltpu.CompilerParams(
            dimension_semantics=("parallel",)),
    )(x_bf16, *wb_args)

    return out[:batch]


def init_dqn_params(key, input_dim, output_dim):
    """Deterministic init mirroring nn.Linear shapes (weights stored transposed: (in, out))."""
    dims = [input_dim, 4 * output_dim, 2 * output_dim, output_dim, output_dim]
    params = {}
    for i in range(4):
        fan_in, fan_out = dims[i], dims[i + 1]
        key, kw, kb = jax.random.split(key, 3)
        bound = 1.0 / jnp.sqrt(fan_in)
        params[f"w{i+1}"] = jax.random.uniform(
            kw, (fan_in, fan_out), jnp.float32, -bound, bound)
        params[f"b{i+1}"] = jax.random.uniform(
            kb, (1, fan_out), jnp.float32, -bound, bound)
    return params


def dqn_reference(x, params):
    """Pure-JAX reference mirroring the kernel's bf16-operand / f32-accumulate path."""
    h = x.astype(jnp.bfloat16)
    for i, relu in ((1, True), (2, True), (3, True), (4, False)):
        w = params[f"w{i}"].astype(jnp.bfloat16)
        b = params[f"b{i}"].astype(jnp.float32)
        h = jnp.dot(h, w, preferred_element_type=jnp.float32) + b
        if relu:
            h = jnp.maximum(h, 0.0).astype(jnp.bfloat16)
    return h


if __name__ == "__main__":
    key = jax.random.PRNGKey(0)
    input_dim, output_dim = 32, 8

    kx1, kx2, kp = jax.random.split(key, 3)
    params = init_dqn_params(kp, input_dim, output_dim)

    # Test 1: toy batch (single grid step).
    x1 = jax.random.normal(kx1, (8, input_dim), jnp.float32)
    out1 = jax.block_until_ready(dqn_forward(x1, params))
    ref1 = dqn_reference(x1, params)
    assert out1.shape == (8, output_dim)
    assert jnp.allclose(out1, ref1, atol=2e-3, rtol=2e-3)

    # Test 2: non-multiple batch with an explicit small tile -> exercises the
    # batch-tiled grid (4 steps) plus padding/slicing of the ragged tail.
    x2 = jax.random.normal(kx2, (100, input_dim), jnp.float32)
    out2 = jax.block_until_ready(dqn_forward(x2, params, batch_tile=32))
    ref2 = dqn_reference(x2, params)
    assert out2.shape == (100, output_dim)
    assert jnp.allclose(out2, ref2, atol=2e-3, rtol=2e-3)

    print("KERNEL_OK")
</pallas_src>

<mosaic_0001>
module attributes {stable_mosaic.version = 11 : i64} {
  func.func @dqn_kernel(%arg0: i32, %arg1: memref<8x32xbf16, #tpu.memory_space<vmem>>, %arg2: memref<32x32xbf16, #tpu.memory_space<vmem>>, %arg3: memref<1x32xf32, #tpu.memory_space<vmem>>, %arg4: memref<32x16xbf16, #tpu.memory_space<vmem>>, %arg5: memref<1x16xf32, #tpu.memory_space<vmem>>, %arg6: memref<16x8xbf16, #tpu.memory_space<vmem>>, %arg7: memref<1x8xf32, #tpu.memory_space<vmem>>, %arg8: memref<8x8xbf16, #tpu.memory_space<vmem>>, %arg9: memref<1x8xf32, #tpu.memory_space<vmem>>, %arg10: memref<8x8xf32, #tpu.memory_space<vmem>>) attributes {dimension_semantics = [#tpu.dimension_semantics<parallel>], iteration_bounds = array<i64: 1>, scalar_prefetch = 0 : i64, scratch_operands = 0 : i64, tpu.core_type = #tpu.core_type<tc>, window_params = [{transform_indices = @transform_0, window_bounds = array<i64: 8, 32>}, {pipeline_mode = #tpu.pipeline_mode<synchronous>, transform_indices = @transform_1, window_bounds = array<i64: 32, 32>}, {pipeline_mode = #tpu.pipeline_mode<synchronous>, transform_indices = @transform_2, window_bounds = array<i64: 1, 32>}, {pipeline_mode = #tpu.pipeline_mode<synchronous>, transform_indices = @transform_3, window_bounds = array<i64: 32, 16>}, {pipeline_mode = #tpu.pipeline_mode<synchronous>, transform_indices = @transform_4, window_bounds = array<i64: 1, 16>}, {pipeline_mode = #tpu.pipeline_mode<synchronous>, transform_indices = @transform_5, window_bounds = array<i64: 16, 8>}, {pipeline_mode = #tpu.pipeline_mode<synchronous>, transform_indices = @transform_6, window_bounds = array<i64: 1, 8>}, {pipeline_mode = #tpu.pipeline_mode<synchronous>, transform_indices = @transform_7, window_bounds = array<i64: 8, 8>}, {pipeline_mode = #tpu.pipeline_mode<synchronous>, transform_indices = @transform_8, window_bounds = array<i64: 1, 8>}, {transform_indices = @transform_9, window_bounds = array<i64: 8, 8>}]} {
    %c0 = arith.constant 0 : index
    %c0_0 = arith.constant 0 : index
    %0 = vector.load %arg1[%c0, %c0_0] : memref<8x32xbf16, #tpu.memory_space<vmem>>, vector<8x32xbf16>
    %c0_1 = arith.constant 0 : index
    %c0_2 = arith.constant 0 : index
    %1 = vector.load %arg2[%c0_1, %c0_2] : memref<32x32xbf16, #tpu.memory_space<vmem>>, vector<32x32xbf16>
    %cst = arith.constant dense<0.000000e+00> : vector<8x32xf32>
    %2 = tpu.matmul %0, %1, %cst {dimension_numbers = #tpu.dot_dimension_numbers<[1], [0], [0], [1], [0, 0, 1, 1], [], []>} : vector<8x32xbf16>, vector<32x32xbf16>, vector<8x32xf32> -> vector<8x32xf32>
    %c0_3 = arith.constant 0 : index
    %c0_4 = arith.constant 0 : index
    %3 = vector.load %arg3[%c0_3, %c0_4] : memref<1x32xf32, #tpu.memory_space<vmem>>, vector<1x32xf32>
    %4 = vector.broadcast %3 : vector<1x32xf32> to vector<8x32xf32>
    %5 = arith.addf %2, %4 : vector<8x32xf32>
    %cst_5 = arith.constant 0.000000e+00 : f32
    %6 = vector.broadcast %cst_5 : f32 to vector<8x32xf32>
    %7 = arith.maximumf %5, %6 : vector<8x32xf32>
    %8 = arith.truncf %7 : vector<8x32xf32> to vector<8x32xbf16>
    %c0_6 = arith.constant 0 : index
    %c0_7 = arith.constant 0 : index
    %9 = vector.load %arg4[%c0_6, %c0_7] : memref<32x16xbf16, #tpu.memory_space<vmem>>, vector<32x16xbf16>
    %cst_8 = arith.constant dense<0.000000e+00> : vector<8x16xf32>
    %10 = tpu.matmul %8, %9, %cst_8 {dimension_numbers = #tpu.dot_dimension_numbers<[1], [0], [0], [1], [0, 0, 1, 1], [], []>} : vector<8x32xbf16>, vector<32x16xbf16>, vector<8x16xf32> -> vector<8x16xf32>
    %c0_9 = arith.constant 0 : index
    %c0_10 = arith.constant 0 : index
    %11 = vector.load %arg5[%c0_9, %c0_10] : memref<1x16xf32, #tpu.memory_space<vmem>>, vector<1x16xf32>
    %12 = vector.broadcast %11 : vector<1x16xf32> to vector<8x16xf32>
    %13 = arith.addf %10, %12 : vector<8x16xf32>
    %cst_11 = arith.constant 0.000000e+00 : f32
    %14 = vector.broadcast %cst_11 : f32 to vector<8x16xf32>
    %15 = arith.maximumf %13, %14 : vector<8x16xf32>
    %16 = arith.truncf %15 : vector<8x16xf32> to vector<8x16xbf16>
    %c0_12 = arith.constant 0 : index
    %c0_13 = arith.constant 0 : index
    %17 = vector.load %arg6[%c0_12, %c0_13] : memref<16x8xbf16, #tpu.memory_space<vmem>>, vector<16x8xbf16>
    %cst_14 = arith.constant dense<0.000000e+00> : vector<8x8xf32>
    %18 = tpu.matmul %16, %17, %cst_14 {dimension_numbers = #tpu.dot_dimension_numbers<[1], [0], [0], [1], [0, 0, 1, 1], [], []>} : vector<8x16xbf16>, vector<16x8xbf16>, vector<8x8xf32> -> vector<8x8xf32>
    %c0_15 = arith.constant 0 : index
    %c0_16 = arith.constant 0 : index
    %19 = vector.load %arg7[%c0_15, %c0_16] : memref<1x8xf32, #tpu.memory_space<vmem>>, vector<1x8xf32>
    %20 = vector.broadcast %19 : vector<1x8xf32> to vector<8x8xf32>
    %21 = arith.addf %18, %20 : vector<8x8xf32>
    %cst_17 = arith.constant 0.000000e+00 : f32
    %22 = vector.broadcast %cst_17 : f32 to vector<8x8xf32>
    %23 = arith.maximumf %21, %22 : vector<8x8xf32>
    %24 = arith.truncf %23 : vector<8x8xf32> to vector<8x8xbf16>
    %c0_18 = arith.constant 0 : index
    %c0_19 = arith.constant 0 : index
    %25 = vector.load %arg8[%c0_18, %c0_19] : memref<8x8xbf16, #tpu.memory_space<vmem>>, vector<8x8xbf16>
    %cst_20 = arith.constant dense<0.000000e+00> : vector<8x8xf32>
    %26 = tpu.matmul %24, %25, %cst_20 {dimension_numbers = #tpu.dot_dimension_numbers<[1], [0], [0], [1], [0, 0, 1, 1], [], []>} : vector<8x8xbf16>, vector<8x8xbf16>, vector<8x8xf32> -> vector<8x8xf32>
    %c0_21 = arith.constant 0 : index
    %c0_22 = arith.constant 0 : index
    %27 = vector.load %arg9[%c0_21, %c0_22] : memref<1x8xf32, #tpu.memory_space<vmem>>, vector<1x8xf32>
    %28 = vector.broadcast %27 : vector<1x8xf32> to vector<8x8xf32>
    %29 = arith.addf %26, %28 : vector<8x8xf32>
    %c0_23 = arith.constant 0 : index
    %c0_24 = arith.constant 0 : index
    %30 = vector.load %arg10[%c0_23, %c0_24] : memref<8x8xf32, #tpu.memory_space<vmem>>, vector<8x8xf32>
    tpu.vector_store %arg10[%c0_23, %c0_24], %29 {strides = array<i32>} : memref<8x8xf32, #tpu.memory_space<vmem>>, vector<8x8xf32>,
    return
  }
  func.func @transform_0(%arg0: i32) -> (i32, i32) {
    %c0_i32 = arith.constant 0 : i32
    %c0_i32_0 = arith.constant 0 : i32
    return %arg0, %c0_i32 : i32, i32
  }
  func.func @transform_1(%arg0: i32) -> (i32, i32) {
    %c0_i32 = arith.constant 0 : i32
    %c0_i32_0 = arith.constant 0 : i32
    %c0_i32_1 = arith.constant 0 : i32
    return %c0_i32, %c0_i32_0 : i32, i32
  }
  func.func @transform_2(%arg0: i32) -> (i32, i32) {
    %c0_i32 = arith.constant 0 : i32
    %c0_i32_0 = arith.constant 0 : i32
    %c0_i32_1 = arith.constant 0 : i32
    return %c0_i32, %c0_i32_0 : i32, i32
  }
  func.func @transform_3(%arg0: i32) -> (i32, i32) {
    %c0_i32 = arith.constant 0 : i32
    %c0_i32_0 = arith.constant 0 : i32
    %c0_i32_1 = arith.constant 0 : i32
    return %c0_i32, %c0_i32_0 : i32, i32
  }
  func.func @transform_4(%arg0: i32) -> (i32, i32) {
    %c0_i32 = arith.constant 0 : i32
    %c0_i32_0 = arith.constant 0 : i32
    %c0_i32_1 = arith.constant 0 : i32
    return %c0_i32, %c0_i32_0 : i32, i32
  }
  func.func @transform_5(%arg0: i32) -> (i32, i32) {
    %c0_i32 = arith.constant 0 : i32
    %c0_i32_0 = arith.constant 0 : i32
    %c0_i32_1 = arith.constant 0 : i32
    return %c0_i32, %c0_i32_0 : i32, i32
  }
  func.func @transform_6(%arg0: i32) -> (i32, i32) {
    %c0_i32 = arith.constant 0 : i32
    %c0_i32_0 = arith.constant 0 : i32
    %c0_i32_1 = arith.constant 0 : i32
    return %c0_i32, %c0_i32_0 : i32, i32
  }
  func.func @transform_7(%arg0: i32) -> (i32, i32) {
    %c0_i32 = arith.constant 0 : i32
    %c0_i32_0 = arith.constant 0 : i32
    %c0_i32_1 = arith.constant 0 : i32
    return %c0_i32, %c0_i32_0 : i32, i32
  }
  func.func @transform_8(%arg0: i32) -> (i32, i32) {
    %c0_i32 = arith.constant 0 : i32
    %c0_i32_0 = arith.constant 0 : i32
    %c0_i32_1 = arith.constant 0 : i32
    return %c0_i32, %c0_i32_0 : i32, i32
  }
  func.func @transform_9(%arg0: i32) -> (i32, i32) {
    %c0_i32 = arith.constant 0 : i32
    %c0_i32_0 = arith.constant 0 : i32
    return %arg0, %c0_i32 : i32, i32
  }
}

</mosaic_0001>

<bundles_post_ra>
// kernel: dqn_forward.1
= control target key start
LH: loop header
LB: loop body
LE: loop exit
PB: predicated region body
PF: predicated region fallthrough
CT: control target
= control target key end

     0   :  { %v387_v1 = vmov 0.0   ;;  %vm388_vm0 = vmmov 0   ;;  %s491_s0 = inlined_call_operand.vmem [shape: bf16[8,32], index: 0, kind: input, shape index: {}]   ;;  %s492_s1 = inlined_call_operand.vmem [shape: bf16[32,32], index: 1, kind: input, shape index: {}]   ;;  %s493_s2 = inlined_call_operand.vmem [shape: f32[1,32], index: 2, kind: input, shape index: {}]   ;;  %s494_s3 = inlined_call_operand.vmem [shape: bf16[32,16], index: 3, kind: input, shape index: {}]   ;;  %s495_s4 = inlined_call_operand.vmem [shape: f32[1,16], index: 4, kind: input, shape index: {}]   ;;  %s496_s5 = inlined_call_operand.vmem [shape: bf16[16,8], index: 5, kind: input, shape index: {}]   ;;  %s497_s6 = inlined_call_operand.vmem [shape: f32[1,8], index: 6, kind: input, shape index: {}]   ;;  %s498_s7 = inlined_call_operand.vmem [shape: bf16[8,8], index: 7, kind: input, shape index: {}]   ;;  %s499_s8 = inlined_call_operand.vmem [shape: f32[1,8], index: 8, kind: input, shape index: {}]   ;;  %s500_s9 = inlined_call_operand.hbm [shape: f32[8,8], index: 9, kind: output, shape index: {}]  }
   0x1   :  { %v358_v0 = vld [vmem:[%s492_s1] sm:$0xff]   ;;  %327 = vmatprep.subr.bf16.mxu0 %v387_v1  ;;  %335 = vmatprep.subr.bf16.mxu1 %v387_v1  ;;  %v359_v2 = vld [vmem:[%s492_s1 + $0x8] sm:$0xff]  }
   0x2   :  { %328 = vmatpush3.bf16.msra.mxu0 %v358_v0  ;;  %331 = vmatprep.mubr.msk.bf16.mxu0 %vm388_vm0, %v387_v1 }
   0x3   :  { %329 = vmatprep.subr.bf16.mxu0 %v387_v1  ;;  %339 = vmatprep.mubr.msk.bf16.mxu1 %vm388_vm0, %v387_v1 }
   0x4   :  { %14 = vsyncpa [#allocation3], 0  ;;  %v34_v3 = vld [vmem:[%s491_s0] sm:$0xf]  ;;  %vm58_vm1 = vcmask 261120   ;;  %v361_v5 = vld [vmem:[%s494_s3 + $0x8] sm:$0xff]  }
   0x5   :  { %v360_v4 = vld [vmem:[%s494_s3] sm:$0xff]   ;;  %vm245_vm2 = vcmask 1043456   ;;  %vm187_vm3 = vcmask 130048   ;;  %vm241_vm4 = vcmask 64512   ;;  %s389_s24 = smov [#allocation2]  }
   0x6   :  { %330 = vmatpush3.bf16.msra.mxu0 %v359_v2  ;;  %336 = vmatpush3.bf16.msra.mxu1 %v360_v4  ;;  %v362_v6 = vld [vmem:[%s496_s5] sm:$0xff]   ;;  %s296_s25 = sshll.u32 %s389_s24, 4  ;;  %s297_s25 = int_to_ptr.vmem [resolvable:$true] %s296_s25 }
   0x7   :  { %343 = vmatprep.subr.bf16.mxu0 %v387_v1  ;;  %337 = vmatprep.subr.bf16.mxu1 %v387_v1  ;;  %v304_v7 = vld [vmem:[%s493_s2] ss:$0 sm:$0xff]  ;;  %p368_p1 = scmp.lt.s32.totalorder %s297_s25, %s297_s25 }
   0x8   :  { %v233_v15 = vld [vmem:[%s498_s7] sm:$0xf] }
   0x9   :  { %332 = vmatmul.mubr.msk.bf16.vlgmr.msra.gmra.mrb[0].mxu0 %vm58_vm1, %v34_v3  ;;  %v247_v16 = vsel %vm245_vm2, %v233_v15, 0  ;;  %v308_v17 = vld [vmem:[%s495_s4] ss:$0 sm:$0xff] }
   0xa   :  { %345 = vmatprep.mubr.msk.bf16.mxu0 %vm388_vm0, %v387_v1  ;;  %338 = vmatpush3.bf16.msra.mxu1 %v361_v5  ;;  %v312_v25 = vld [vmem:[%s497_s6] ss:$0 sm:$0xff]  ;;  %s363_s6 = scalar_lea.vmem %s297_s25, 128 }
   0xb   :  { %349 = vmatprep.subr.bf16.mxu1 %v387_v1  ;;  %344 = vmatpush3.bf16.msra.mxu0 %v362_v6  ;;  %v315_v33 = vld [vmem:[%s499_s8] ss:$0 sm:$0xff]  ;;  %p364_p0 = scmp.ne.s32.totalorder %s297_s25, %s363_s6  ;;  %p369_p2 = scmp.lt.s32.totalorder %s363_s6, %s363_s6 }
   0xd   :  { %p370_p3 = por %p369_p2, %p368_p1 }
   0xf   :  { %p371_p4 = pnand %p370_p3, %p364_p0 }
  0xdc   :  { %v96_v8 = vpop.f32.mrb[0].mxu0 }
  0xdd   :  { %v97_v9 = vadd.f32 %v304_v7, %v96_v8  ;;  %v333_v10 = vpop.f32.mrb[1].mxu0 }
  0xde   :  { %v99_v11 = vpop.f32.mrb[2].mxu0 }
  0xdf   :  { %v102_v12 = vmax.f32 %v97_v9, 0.0  ;;  %v334_v13 = vpop.f32.mrb[3].mxu0 }
  0xe1   :  { %v103_v14 = vpack.c.bf16 %v102_v12, %v102_v12 }
  0xe3   :  { %340 = vmatmul.mubr.msk.bf16.vlgmr.msra.gmra.mrb[0].mxu1 %vm58_vm1, %v103_v14 }
  0xe4   :  { %351 = vmatprep.mubr.msk.bf16.mxu1 %vm388_vm0, %v387_v1  ;;  %350 = vmatpush3.bf16.msra.mxu1 %v247_v16 }
 0x1b6   :  { %v164_v18 = vpop.f32.mrb[0].mxu1 }
 0x1b7   :  { %v165_v19 = vadd.f32 %v308_v17, %v164_v18  ;;  %v341_v20 = vpop.f32.mrb[1].mxu1 }
 0x1b8   :  { %v167_v21 = vpop.f32.mrb[2].mxu1 }
 0x1b9   :  { %v170_v22 = vmax.f32 %v165_v19, 0.0  ;;  %v342_v23 = vpop.f32.mrb[3].mxu1 }
 0x1bb   :  { %v171_v24 = vpack.c.bf16 %v170_v22, %v170_v22 }
 0x1bd   :  { %346 = vmatmul.mubr.msk.bf16.vlgmr.msra.gmra.mrb[4].mxu0 %vm187_vm3, %v171_v24 }
 0x290   :  { %v225_v26 = vpop.f32.mrb[4].mxu0 }
 0x291   :  { %v226_v27 = vadd.f32 %v312_v25, %v225_v26  ;;  %v347_v28 = vpop.f32.mrb[5].mxu0 }
 0x292   :  { %v228_v29 = vpop.f32.mrb[6].mxu0 }
 0x293   :  { %v231_v30 = vmax.f32 %v226_v27, 0.0  ;;  %v348_v31 = vpop.f32.mrb[7].mxu0 }
 0x295   :  { %v232_v32 = vpack.c.bf16 %v231_v30, %v231_v30 }
 0x297   :  { %352 = vmatmul.mubr.msk.bf16.vlgmr.msra.gmra.mrb[4].mxu1 %vm241_vm4, %v232_v32 }
 0x36a   :  { %v283_v34 = vpop.f32.mrb[4].mxu1 }
 0x36b   :  { %v284_v35 = vadd.f32 %v315_v33, %v283_v34  ;;  %v353_v36 = vpop.f32.mrb[5].mxu1 }
 0x36c   :  { %v286_v37 = vpop.f32.mrb[6].mxu1 }
 0x36d   :  { %289 = vst.msk [vmem:[#allocation2] sm:$0xff] %vm241_vm4, %v284_v35  ;;  %v354_v38 = vpop.f32.mrb[7].mxu1 }
 0x36e   :  { %374 = shalt.err (!%p371_p4)
}
 0x36f   :  { %s375_s8 = scalar_lea.hbm %s500_s9, 128 }
 0x370   :  { %p376_p5 = scmp.ne.s32.totalorder %s500_s9, %s375_s8  ;;  %p379_p6 = scmp.lt.u32.totalorder %s375_s8, %s500_s9 }
 0x372   :  { %p381_p7 = pnand %p379_p6, %p376_p5 }
 0x374   :  { %384 = shalt.err (!%p381_p7)
}
 0x375   :  { %299 = dma.vmem_to_hbm [thread:$0]  %s297_s25, 128, %s500_s9, [#allocation3]  }
 0x376   :  { %385 = dma.done.wait [#allocation3], 128  }
 0x377   :  { %386 = vsyncadd [#allocation3], 4294967168 }
 0x378   :  { %303 = vsyncpa [#allocation3], 1 }

</bundles_post_ra>
